<compile_context>
chip_gen: v5e
topology: v5e:2x2
jax: 0.10.0
libtpu: 0.0.40
codegen_flags: <defaults>
</compile_context>

<pallas_src>
import functools

import jax
import jax.numpy as jnp
from jax import lax
from jax.experimental import pallas as pl
from jax.experimental.pallas import tpu as pltpu


def _round_up(x, m):
    return ((x + m - 1) // m) * m


def _cdiv(a, b):
    return (a + b - 1) // b


def _fit_tile(dim, tile_max, align):
    """Smallest `align`-aligned tile covering `dim` in ceil(dim/tile_max) blocks.

    Minimizes edge-block waste (e.g. dim=300, tile_max=512 -> 304, not 512)."""
    tile_max = max(align, (tile_max // align) * align)
    nblocks = _cdiv(dim, tile_max)
    return min(tile_max, _round_up(_cdiv(dim, nblocks), align))


def _choose_k_tiling(K, tk_max):
    """Pick (tk, padded_K).

    K is the contraction dim: out-of-bounds garbage there would contaminate
    real outputs (unlike M/N edge garbage, which lands in discarded rows/cols),
    so tk must divide the (possibly padded) K extent exactly.  Prefer a
    lane-aligned divisor of K so the weight never needs an HBM pad copy."""
    tk_max = max(128, (tk_max // 128) * 128)
    if K % 128 == 0:
        if K <= tk_max:
            return K, K
        for cand in range(tk_max, 127, -128):
            if K % cand == 0:
                return cand, K
    Kp = _round_up(K, 128)
    if Kp <= tk_max:
        return Kp, Kp
    for cand in range(tk_max, 127, -128):
        if Kp % cand == 0:
            return cand, Kp
    return tk_max, _round_up(K, tk_max)  # unreachable safety net


def _nt_dot(x, w):
    # x: [tm, tk], w: [tn, tk]; contract the lane (K) dims -> [tm, tn].
    # Keeps the weight in its native [N, K] layout (no HBM transpose pass).
    # TODO(synk): if a bundle dump shows per-K-step XLU vxpose for this NT
    # form, flip the parameter layout to [K, N] at the model level (free)
    # rather than transposing in the wrapper.
    return lax.dot_general(
        x, w,
        dimension_numbers=(((1,), (1,)), ((), ())),
        preferred_element_type=jnp.float32,
    )


def _make_kernel(has_bias, accumulate_in_output):
    """Build the matmul(+bias) kernel variant.

    accumulate_in_output=True  -> f32 output: accumulate directly into the
                                  resident output tile (no scratch).
    accumulate_in_output=False -> low-precision output: f32 scratch, cast once.
    Bias (when present) is fused into the k==0 accumulator init."""
    if accumulate_in_output:
        if has_bias:
            def kernel(x_ref, w_ref, b_ref, o_ref):
                k = pl.program_id(2)

                @pl.when(k == 0)
                def _():
                    o_ref[...] = jnp.broadcast_to(b_ref[...], o_ref.shape)

                o_ref[...] += _nt_dot(x_ref[...], w_ref[...])
        else:
            def kernel(x_ref, w_ref, o_ref):
                k = pl.program_id(2)

                @pl.when(k == 0)
                def _():
                    o_ref[...] = jnp.zeros_like(o_ref)

                o_ref[...] += _nt_dot(x_ref[...], w_ref[...])
    else:
        if has_bias:
            def kernel(x_ref, w_ref, b_ref, o_ref, acc_ref):
                k = pl.program_id(2)

                @pl.when(k == 0)
                def _():
                    acc_ref[...] = jnp.broadcast_to(b_ref[...], acc_ref.shape)

                acc_ref[...] += _nt_dot(x_ref[...], w_ref[...])

                @pl.when(k == pl.num_programs(2) - 1)
                def _():
                    o_ref[...] = acc_ref[...].astype(o_ref.dtype)
        else:
            def kernel(x_ref, w_ref, o_ref, acc_ref):
                k = pl.program_id(2)

                @pl.when(k == 0)
                def _():
                    acc_ref[...] = jnp.zeros_like(acc_ref)

                acc_ref[...] += _nt_dot(x_ref[...], w_ref[...])

                @pl.when(k == pl.num_programs(2) - 1)
                def _():
                    o_ref[...] = acc_ref[...].astype(o_ref.dtype)
    return kernel


@functools.lru_cache(maxsize=1)
def _vmem_limit_bytes():
    """Generation-aware scoped-VMEM limit (v7x: 64 MiB physical; v5e/v6e: 128)."""
    try:
        cap = int(pltpu.get_tpu_info().vmem_capacity_bytes)
    except Exception:
        cap = 64 * 1024 * 1024
    limit = min(cap - 8 * 1024 * 1024, 112 * 1024 * 1024)
    return int(max(limit, 32 * 1024 * 1024))


def _spec(block_shape, index_map, buffered):
    if buffered is None:
        return pl.BlockSpec(block_shape, index_map)
    return pl.BlockSpec(block_shape, index_map, pipeline_mode=buffered)


@functools.partial(jax.jit, static_argnames=("tm", "tn", "tk"))
def coc_row_parallel_linear_forward(input_, weight, bias=None, *,
                                    tm=512, tn=512, tk=1024):
    """Pallas implementation of CoCRowParallelLinearImpl.forward.

    input_: [S, B, K]  (K = input_size_per_partition)
    weight: [N, K]     (N = output_size)
    bias:   [N] or None
    returns (output [S, B, N], output_bias=None)   # skip_bias_add=False path
    """
    S, B, K = input_.shape
    N = weight.shape[0]
    M = S * B
    out_dtype = input_.dtype
    has_bias = bias is not None

    # ---- tile selection (edge-waste minimizing, (8,128)-aligned) ----
    tm = _fit_tile(M, tm, 8)
    tn = _fit_tile(N, tn, 128)
    tk, Kp = _choose_k_tiling(K, tk)

    # v7x has two TensorCores: expose >= 2 parallel output blocks when possible.
    if _cdiv(M, tm) * _cdiv(N, tn) < 2:
        if N >= 256:
            tn = _round_up(_cdiv(N, 2), 128)
        elif M >= 16:
            tm = _round_up(_cdiv(M, 2), 8)

    grid = (_cdiv(M, tm), _cdiv(N, tn), Kp // tk)

    # ---- operands (K-only padding; M/N handled by uneven-grid masking) ----
    x2d = input_.reshape(M, K)
    w = weight
    if Kp != K:
        x2d = jnp.pad(x2d, ((0, 0), (0, Kp - K)))
        w = jnp.pad(w, ((0, 0), (0, Kp - K)))

    operands = [x2d, w]
    if has_bias:
        operands.append(bias.reshape(1, N).astype(jnp.float32))

    # Deep input buffering for GEMV-like / decode shapes (weight-BW bound).
    deep = pl.Buffered(3) if (grid[0] == 1 and grid[2] >= 2) else None

    in_specs = [
        _spec((tm, tk), lambda i, j, k: (i, k), deep),   # x tile
        _spec((tn, tk), lambda i, j, k: (j, k), deep),   # weight tile [N, K]
    ]
    if has_bias:
        in_specs.append(pl.BlockSpec((1, tn), lambda i, j, k: (0, j)))

    accumulate_in_output = out_dtype == jnp.float32
    kernel = _make_kernel(has_bias, accumulate_in_output)
    scratch = [] if accumulate_in_output else [pltpu.VMEM((tm, tn), jnp.float32)]

    x_bytes = jnp.dtype(input_.dtype).itemsize
    w_bytes = jnp.dtype(weight.dtype).itemsize
    o_bytes = jnp.dtype(out_dtype).itemsize
    g_m, g_n, _ = grid
    cost = pl.CostEstimate(
        flops=2 * M * N * Kp,
        transcendentals=0,
        bytes_accessed=int(M * Kp * x_bytes * g_n     # x re-read per N block
                           + N * Kp * w_bytes * g_m   # w re-read per M block
                           + M * N * o_bytes
                           + (N * 4 * g_m if has_bias else 0)),
    )

    out2d = pl.pallas_call(
        kernel,
        out_shape=jax.ShapeDtypeStruct((M, N), out_dtype),
        grid_spec=pltpu.PrefetchScalarGridSpec(
            num_scalar_prefetch=0,
            grid=grid,
            in_specs=in_specs,
            out_specs=pl.BlockSpec((tm, tn), lambda i, j, k: (i, j)),
            scratch_shapes=scratch,
        ),
        compiler_params=pltpu.CompilerParams(
            dimension_semantics=("parallel", "parallel", "arbitrary"),
            vmem_limit_bytes=_vmem_limit_bytes(),
        ),
        cost_estimate=cost,
    )(*operands)

    # TODO(synk): for tensor_model_parallel_world_size > 1 the CoC row-parallel
    # function overlaps an all-reduce / reduce-scatter of the output with the
    # matmul; with world_size=1 it is an identity, so nothing to do here.
    # TODO(synk): skip_bias_add=True would return (matmul_out, bias) un-fused.
    output = out2d.reshape(S, B, N)
    output_bias = None                  # skip_bias_add=False -> bias already fused
    return output, output_bias


if __name__ == "__main__":
    # ---- Test 1: module-like small config (f32, zero-init bias) ----
    seq, batch = 8, 2
    input_size_per_partition = 256      # K
    output_size = 128                   # N

    key = jax.random.PRNGKey(0)
    k_x, k_w = jax.random.split(key)

    input_ = jax.random.normal(
        k_x, (seq, batch, input_size_per_partition), dtype=jnp.float32)
    weight = jax.random.normal(
        k_w, (output_size, input_size_per_partition), dtype=jnp.float32) * 0.02
    bias = jnp.zeros((output_size,), dtype=jnp.float32)   # module zero-inits bias

    output, output_bias = coc_row_parallel_linear_forward(input_, weight, bias)
    output = jax.block_until_ready(output)

    ref = jnp.einsum("sbk,nk->sbn", input_, weight) + bias
    assert output.shape == (seq, batch, output_size)
    assert jnp.allclose(output, ref, atol=1e-4, rtol=1e-4)
    assert output_bias is None

    # ---- Test 2: non-tile-divisible shapes (uneven M/N grid + K padding) ----
    s2, bt2, k2, n2 = 5, 3, 200, 96
    kx2, kw2, kb2 = jax.random.split(jax.random.PRNGKey(1), 3)
    x2 = jax.random.normal(kx2, (s2, bt2, k2), dtype=jnp.float32)
    w2 = jax.random.normal(kw2, (n2, k2), dtype=jnp.float32) * 0.02
    b2 = jax.random.normal(kb2, (n2,), dtype=jnp.float32) * 0.1
    out2, _ = coc_row_parallel_linear_forward(x2, w2, b2)
    out2 = jax.block_until_ready(out2)
    ref2 = jnp.einsum("sbk,nk->sbn", x2, w2) + b2
    assert out2.shape == (s2, bt2, n2)
    assert jnp.allclose(out2, ref2, atol=1e-4, rtol=1e-4)

    # ---- Test 3: bf16, GEMV-like small-M with multiple K steps ----
    # Exercises the f32-scratch accumulator path and Buffered(3) input specs.
    s3, bt3, k3, n3 = 2, 2, 512, 256
    kx3, kw3, kb3 = jax.random.split(jax.random.PRNGKey(2), 3)
    x3 = jax.random.normal(kx3, (s3, bt3, k3), dtype=jnp.float32).astype(jnp.bfloat16)
    w3 = (jax.random.normal(kw3, (n3, k3), dtype=jnp.float32) * 0.02).astype(jnp.bfloat16)
    b3 = (jax.random.normal(kb3, (n3,), dtype=jnp.float32) * 0.1).astype(jnp.bfloat16)
    out3, _ = coc_row_parallel_linear_forward(x3, w3, b3, tm=64, tn=128, tk=128)
    out3 = jax.block_until_ready(out3)
    ref3 = (jnp.einsum("sbk,nk->sbn", x3.astype(jnp.float32), w3.astype(jnp.float32))
            + b3.astype(jnp.float32))
    assert out3.shape == (s3, bt3, n3)
    assert out3.dtype == jnp.bfloat16
    assert jnp.allclose(out3.astype(jnp.float32), ref3, atol=2e-2, rtol=2e-2)

    print("KERNEL_OK")
</pallas_src>

<mosaic_0001>
module attributes {stable_mosaic.version = 11 : i64} {
  func.func @kernel(%arg0: i32, %arg1: i32, %arg2: i32, %arg3: memref<8x256xf32, #tpu.memory_space<vmem>>, %arg4: memref<128x256xf32, #tpu.memory_space<vmem>>, %arg5: memref<1x128xf32, #tpu.memory_space<vmem>>, %arg6: memref<8x128xf32, #tpu.memory_space<vmem>>) attributes {dimension_semantics = [#tpu.dimension_semantics<parallel>, #tpu.dimension_semantics<parallel>, #tpu.dimension_semantics<arbitrary>], iteration_bounds = array<i64: 2, 1, 1>, scalar_prefetch = 0 : i64, scratch_operands = 0 : i64, tpu.core_type = #tpu.core_type<tc>, window_params = [{transform_indices = @transform_0, window_bounds = array<i64: 8, 256>}, {transform_indices = @transform_1, window_bounds = array<i64: 128, 256>}, {transform_indices = @transform_2, window_bounds = array<i64: 1, 128>}, {transform_indices = @transform_3, window_bounds = array<i64: 8, 128>}]} {
    %c0_i32 = arith.constant 0 : i32
    %0 = arith.cmpi eq, %arg2, %c0_i32 : i32
    %1 = arith.extui %0 : i1 to i32
    %c0_i32_0 = arith.constant 0 : i32
    %2 = arith.cmpi ne, %1, %c0_i32_0 : i32
    scf.if %2 {
      %c0_8 = arith.constant 0 : index
      %c0_9 = arith.constant 0 : index
      %9 = vector.load %arg5[%c0_8, %c0_9] : memref<1x128xf32, #tpu.memory_space<vmem>>, vector<1x128xf32>
      %10 = vector.shape_cast %9 : vector<1x128xf32> to vector<1x128xf32>
      %11 = vector.broadcast %10 : vector<1x128xf32> to vector<8x128xf32>
      %c0_10 = arith.constant 0 : index
      %c0_11 = arith.constant 0 : index
      %12 = vector.load %arg6[%c0_10, %c0_11] : memref<8x128xf32, #tpu.memory_space<vmem>>, vector<8x128xf32>
      tpu.vector_store %arg6[%c0_10, %c0_11], %11 {strides = array<i32>} : memref<8x128xf32, #tpu.memory_space<vmem>>, vector<8x128xf32>,
    } else {
    }
    %c0 = arith.constant 0 : index
    %c0_1 = arith.constant 0 : index
    %3 = vector.load %arg6[%c0, %c0_1] : memref<8x128xf32, #tpu.memory_space<vmem>>, vector<8x128xf32>
    %c0_2 = arith.constant 0 : index
    %c0_3 = arith.constant 0 : index
    %4 = vector.load %arg3[%c0_2, %c0_3] : memref<8x256xf32, #tpu.memory_space<vmem>>, vector<8x256xf32>
    %c0_4 = arith.constant 0 : index
    %c0_5 = arith.constant 0 : index
    %5 = vector.load %arg4[%c0_4, %c0_5] : memref<128x256xf32, #tpu.memory_space<vmem>>, vector<128x256xf32>
    %cst = arith.constant dense<0.000000e+00> : vector<8x128xf32>
    %6 = tpu.matmul %4, %5, %cst {dimension_numbers = #tpu.dot_dimension_numbers<[1], [1], [0], [0], [0, 0, 1, 0], [], []>} : vector<8x256xf32>, vector<128x256xf32>, vector<8x128xf32> -> vector<8x128xf32>
    %7 = arith.addf %3, %6 : vector<8x128xf32>
    %c0_6 = arith.constant 0 : index
    %c0_7 = arith.constant 0 : index
    %8 = vector.load %arg6[%c0_6, %c0_7] : memref<8x128xf32, #tpu.memory_space<vmem>>, vector<8x128xf32>
    tpu.vector_store %arg6[%c0_6, %c0_7], %7 {strides = array<i32>} : memref<8x128xf32, #tpu.memory_space<vmem>>, vector<8x128xf32>,
    return
  }
  func.func @transform_0(%arg0: i32, %arg1: i32, %arg2: i32) -> (i32, i32) {
    %c0_i32 = arith.constant 0 : i32
    return %arg0, %arg2 : i32, i32
  }
  func.func @transform_1(%arg0: i32, %arg1: i32, %arg2: i32) -> (i32, i32) {
    %c0_i32 = arith.constant 0 : i32
    return %arg1, %arg2 : i32, i32
  }
  func.func @transform_2(%arg0: i32, %arg1: i32, %arg2: i32) -> (i32, i32) {
    %c0_i32 = arith.constant 0 : i32
    %c0_i32_0 = arith.constant 0 : i32
    return %c0_i32, %arg1 : i32, i32
  }
  func.func @transform_3(%arg0: i32, %arg1: i32, %arg2: i32) -> (i32, i32) {
    %c0_i32 = arith.constant 0 : i32
    return %arg0, %arg1 : i32, i32
  }
}

</mosaic_0001>

<bundles_post_ra>
// kernel: coc_row_parallel_linear_forward.1
= control target key start
LH: loop header
LB: loop body
LE: loop exit
PB: predicated region body
PF: predicated region fallthrough
CT: control target
= control target key end

     0   :  { %8 = vsyncpa [#allocation3], 0  ;;  %s786_s0 = inlined_call_operand.vmem [shape: f32[16,256], index: 0, kind: input, shape index: {}]   ;;  %s787_s1 = inlined_call_operand.hbm [shape: f32[128,256], index: 1, kind: input, shape index: {}]   ;;  %s788_s2 = inlined_call_operand.vmem [shape: f32[1,128], index: 2, kind: input, shape index: {}]   ;;  %s789_s3 = inlined_call_operand.hbm [shape: f32[16,128], index: 3, kind: output, shape index: {}]  }
   0x1   :  { %9 = vsyncpa [#allocation4], 0 }
   0x2   :  { %11 = vsyncpa [#allocation4 + $0x1], 0  ;;  %s683_s12 = smov 0   ;;  %s685_s13 = smov 0  }
   0x3   :  { %s687_s14 = smov 0   ;;  %s689_s15 = smov 0  }
   0x4   :  { %s691_s16 = smov 0   ;;  %s693_s17 = smov 0  }
   0x5 LB: > { %s461_s18 = sadd.s32 4294967295, %s658_s17   ;;  %s462_s19 = sadd.s32 4294967294, %s658_s17   ;;  %s658_s17 = sphi %s693_s17, %s17_s17   ;;  %s654_s16 = sphi %s691_s16, %s796_s16   ;;  %s650_s15 = sphi %s689_s15, %s795_s15   ;;  %s646_s14 = sphi %s687_s14, %s794_s14   ;;  %s642_s13 = sphi %s685_s13, %s793_s13   ;;  %s638_s12 = sphi %s683_s12, %s792_s12  }
   0x6   : > { %s36_s20 = sadd.s32 1, %s654_s16  ;;  %s127_s21 = sadd.s32 1, %s646_s14 }
   0x7   : > { %p38_p0 = scmp.ge.s32.totalorder %s36_s20, 2  ;;  %p137_p1 = scmp.ne.s32.totalorder %s646_s14, %s642_s13 }
   0x8   : > { %p138_p2 = scmp.eq.s32.totalorder %s461_s18, 1  ;;  %p143_p3 = scmp.ne.s32.totalorder %s642_s13, %s638_s12 }
   0x9   : > { %s798_s20 = smov (%p38_p0, %s36_s20), 0  ;;  %p144_p5 = scmp.eq.s32.totalorder %s462_s19, 1 }
   0xa   : > { %p723_p4 = por %p138_p2, %p137_p1  ;;  %s122_s23 = ssub.s32 %s654_s16, %s798_s20 }
   0xb   : > { %p463_p6 = scmp.ge.s32.totalorder %s658_s17, 1  ;;  %p125_p7 = scmp.eq.s32.totalorder %s122_s23, 0 }
   0xc   : > { %p730_p8 = por %p144_p5, %p143_p3  ;;  %p151_p9 = scmp.lt.s32.totalorder %s658_s17, 3 }
   0xd   : > { %s736_s25 = scalar_select %p125_p7, %s646_s14, %s127_s21  }
   0xe   : > { %p152_p10 = pnand %p463_p6, %p151_p9  ;;  %p491_p11 = scmp.eq.s32.totalorder %s461_s18, 0 }
   0xf   : > { %s168_s28 = sshll.u32 %s787_s1, 4  ;;  %s660_s29 = smov [#allocation2]   ;;  %s169_s28 = int_to_ptr.hbm [resolvable:$true] %s168_s28 }
  0x10   : > { %p483_p12 = pneg %p152_p10  ;;  %s170_s30 = sshll.u32 %s660_s29, 4  ;;  %s171_s30 = int_to_ptr.vmem [resolvable:$true] %s170_s30 }
  0x11   : > { %s661_s4 = smov 256   ;;  %s662_s5 = smov 16  }
  0x12   : > { %p484_p13 = pnand %p491_p11, %p483_p12  ;;  %205 = sbr.rel (%p152_p10) target bundleno = 221 (0xdd), region = 32 }
  0x14   : > { %486 = dma.hbm_to_vmem [thread:$0]  (!%p484_p13), %s169_s28, 4096, %s171_s30, [#allocation3], %s661_s4, %s661_s4, %s662_s5  }
  0x17   : > { %629 = dma.done.wait (%p491_p11), [#allocation3], 4096  }
  0x18   : > { %631 = vsyncadd (%p491_p11), [#allocation3], 4294963200  ;;  %v294_v0 = vld [vmem:[#allocation2 + $0xf0] sm:$0xff]  ;;  %v295_v1 = vld [vmem:[#allocation2 + $0xf8] sm:$0xff]  ;;  %p238_p0 = scmp.lt.s32.totalorder %s650_s15, 1  ;;  %s234_s11 = sand.u32 1, %s642_s13  }
  0x19   : > { %296 = vmatpush.xpose.msra.mxu0 %v294_v0  ;;  %316 = vmatpush.xpose.msra.mxu1 %v295_v1  ;;  %v292_v2 = vld [vmem:[#allocation2 + $0xe0] sm:$0xff]  ;;  %v293_v3 = vld [vmem:[#allocation2 + $0xe8] sm:$0xff]  ;;  %v290_v4 = vld [vmem:[#allocation2 + $0xd0] sm:$0xff]  ;;  %s469_s18 = sshll.u32 %s234_s11, 3  ;;  %s473_s19 = sshll.u32 %s650_s15, 3 }
  0x1a   : > { %v291_v5 = vld [vmem:[#allocation2 + $0xd8] sm:$0xff]  ;;  %v288_v6 = vld [vmem:[#allocation2 + $0xc0] sm:$0xff]  ;;  %v289_v7 = vld [vmem:[#allocation2 + $0xc8] sm:$0xff]  ;;  %s239_s6 = scalar_select %p238_p0, %s650_s15, 1 }
  0x1b   : > { %v286_v8 = vld [vmem:[#allocation2 + $0xb0] sm:$0xff]  ;;  %v287_v9 = vld [vmem:[#allocation2 + $0xb8] sm:$0xff]  ;;  %v284_v10 = vld [vmem:[#allocation2 + $0xa0] sm:$0xff]  ;;  %s350_s26 = scalar_lea.hbm %s789_s3, %s473_s19  ;;  %s236_s29 = scalar_lea.vmem [#allocation5], %s469_s18 }
  0x1c   : > { %v285_v11 = vld [vmem:[#allocation2 + $0xa8] sm:$0xff]  ;;  %v282_v12 = vld [vmem:[#allocation2 + $0x90] sm:$0xff]  ;;  %v283_v13 = vld [vmem:[#allocation2 + $0x98] sm:$0xff]  ;;  %s476_s7 = sshll.u32 %s239_s6, 4  ;;  %s352_s30 = sshll.u32 %s236_s29, 4  ;;  %s353_s30 = int_to_ptr.vmem [resolvable:$true] %s352_s30 }
  0x1d   : > { %297 = vmatpush.xpose.msra.mxu0 %v292_v2  ;;  %317 = vmatpush.xpose.msra.mxu1 %v293_v3  ;;  %v280_v14 = vld [vmem:[#allocation2 + $0x80] sm:$0xff]  ;;  %v281_v15 = vld [vmem:[#allocation2 + $0x88] sm:$0xff]  ;;  %v278_v16 = vld [vmem:[#allocation2 + $0x70] sm:$0xff]  ;;  %s245_s10 = scalar_lea.vmem %s786_s0, %s476_s7  ;;  %s354_s4 = sshll.u32 %s350_s26, 4  ;;  %s355_s4 = int_to_ptr.hbm [resolvable:$true] %s354_s4 }
  0x1e   : > { %v279_v17 = vld [vmem:[#allocation2 + $0x78] sm:$0xff]  ;;  %v276_v18 = vld [vmem:[#allocation2 + $0x60] sm:$0xff]  ;;  %v277_v19 = vld [vmem:[#allocation2 + $0x68] sm:$0xff]  ;;  %s339_s15 = scalar_lea.sflag [#allocation4], %s234_s11  ;;  %s590_s5 = sshra.s32 %s355_s4, 4  ;;  %s591_s5 = int_to_ptr.hbm [resolvable:$true] %s590_s5 }
  0x1f   : > { %v274_v20 = vld [vmem:[#allocation2 + $0x50] sm:$0xff]  ;;  %v275_v21 = vld [vmem:[#allocation2 + $0x58] sm:$0xff]  ;;  %v272_v22 = vld [vmem:[#allocation2 + $0x40] sm:$0xff]  ;;  %s592_s6 = scalar_lea.hbm %s591_s5, 8  ;;  %s596_s9 = scalar_lea.hbm %s789_s3, 16 }
  0x20   : > { %v273_v23 = vld [vmem:[#allocation2 + $0x48] sm:$0xff]  ;;  %v270_v24 = vld [vmem:[#allocation2 + $0x30] sm:$0xff]  ;;  %v271_v25 = vld [vmem:[#allocation2 + $0x38] sm:$0xff]  ;;  %p593_p1 = scmp.ne.s32.totalorder %s591_s5, %s592_s6  ;;  %p597_p5 = scmp.lt.s32.totalorder %s591_s5, %s789_s3 }
  0x21   : > { %298 = vmatpush.xpose.msra.mxu0 %v290_v4  ;;  %318 = vmatpush.xpose.msra.mxu1 %v291_v5  ;;  %v268_v26 = vld [vmem:[#allocation2 + $0x20] sm:$0xff]  ;;  %v269_v27 = vld [vmem:[#allocation2 + $0x28] sm:$0xff]  ;;  %v266_v28 = vld [vmem:[#allocation2 + $0x10] sm:$0xff]  ;;  %p598_p6 = scmp.lt.s32.totalorder %s596_s9, %s592_s6 }
  0x22   : > { %v267_v29 = vld [vmem:[#allocation2 + $0x18] sm:$0xff]  ;;  %v264_v30 = vld [vmem:[#allocation2] sm:$0xff]  ;;  %v265_v31 = vld [vmem:[#allocation2 + $0x8] sm:$0xff]  ;;  %p594_p2 = pnand %p593_p1, %p723_p4 }
  0x23   : > { %v262_v32 = vld [vmem:[%s245_s10] sm:$0xff]  ;;  %v263_v33 = vld [vmem:[%s245_s10 + $0x8] sm:$0xff]  ;;  %p599_p7 = por %p598_p6, %p597_p5 }
  0x24   : > { %v545_v34 = vld [vmem:[%s788_s2] ss:$0 sm:$0xff]  ;;  %p595_p3 = pneg %p594_p2 }
  0x25   : > { %299 = vmatpush.xpose.msra.mxu0 %v288_v6  ;;  %319 = vmatpush.xpose.msra.mxu1 %v289_v7 }
  0x26   : > { %p600_p9 = pnand %p599_p7, %p595_p3 }
  0x29   : > { %300 = vmatpush.xpose.msra.mxu0 %v286_v8  ;;  %320 = vmatpush.xpose.msra.mxu1 %v287_v9 }
  0x2d   : > { %301 = vmatpush.xpose.msra.mxu0 %v284_v10  ;;  %321 = vmatpush.xpose.msra.mxu1 %v285_v11 }
  0x31   : > { %302 = vmatpush.xpose.msra.mxu0 %v282_v12  ;;  %322 = vmatpush.xpose.msra.mxu1 %v283_v13 }
  0x35   : > { %303 = vmatpush.xpose.msra.mxu0 %v280_v14  ;;  %323 = vmatpush.xpose.msra.mxu1 %v281_v15 }
  0x39   : > { %304 = vmatpush.xpose.msra.mxu0 %v278_v16  ;;  %324 = vmatpush.xpose.msra.mxu1 %v279_v17 }
  0x3d   : > { %305 = vmatpush.xpose.msra.mxu0 %v276_v18  ;;  %325 = vmatpush.xpose.msra.mxu1 %v277_v19 }
  0x41   : > { %306 = vmatpush.xpose.msra.mxu0 %v274_v20  ;;  %326 = vmatpush.xpose.msra.mxu1 %v275_v21 }
  0x45   : > { %307 = vmatpush.xpose.msra.mxu0 %v272_v22  ;;  %327 = vmatpush.xpose.msra.mxu1 %v273_v23 }
  0x49   : > { %308 = vmatpush.xpose.msra.mxu0 %v270_v24  ;;  %328 = vmatpush.xpose.msra.mxu1 %v271_v25 }
  0x4d   : > { %309 = vmatpush.xpose.msra.mxu0 %v268_v26  ;;  %329 = vmatpush.xpose.msra.mxu1 %v269_v27 }
  0x51   : > { %310 = vmatpush.xpose.msra.mxu0 %v266_v28  ;;  %330 = vmatpush.xpose.msra.mxu1 %v267_v29 }
  0x55   : > { %311 = vmatpush.xpose.msra.mxu0 %v264_v30  ;;  %331 = vmatpush.xpose.msra.mxu1 %v265_v31 }
  0x58   : > { %312 = vmatmul.f32.vlgmr.msra.gmra.mxu0 %v262_v32  ;;  %332 = vmatmul.f32.vlgmr.msra.gmra.mxu1 %v263_v33 }
  0xd5   : > { %v313_v35 = vpop.f32.mrf.mxu0  ;;  %v333_v36 = vpop.f32.mrf.mxu1 }
  0xd6   : > { %v334_v37 = vadd.f32 %v333_v36, %v313_v35 }
  0xd8   : > { %v336_v38 = vadd.f32 %v545_v34, %v334_v37 }
  0xda   : > { %337 = vst [vmem:[%s236_s29] sm:$0xff] %v336_v38 }
  0xdb   : > { %603 = shalt.err (!%p600_p9)
}
  0xdc   : > { %481 = dma.vmem_to_hbm [thread:$0]  (%p723_p4), %s353_s30, 128, %s355_s4, %s339_s15  }
  0xdd PF: > { %p493_p10 = scmp.ge.s32.totalorder %s658_s17, 2  ;;  %s366_s11 = sand.u32 1, %s638_s12  }
  0xde   : > { %s367_s19 = scalar_lea.sflag [#allocation4], %s366_s11 }
  0xdf   : > { %p488_p11 = pnand %p493_p10, %p730_p8 }
  0xe1   : > { %p489_p12 = pneg %p488_p11 }
  0xe3   : > { %633 = dma.done.wait (%p489_p12), %s367_s19, 128  }
  0xe4   : > { %635 = vsyncadd (%p489_p12), %s367_s19, 4294967168  ;;  %s17_s17 = sadd.s32 1, %s658_s17   ;;  %s792_s12 = smov %s642_s13 }
  0xe5   : > { %p14_p13 = scmp.ge.s32.totalorder %s17_s17, 4   ;;  %s793_s13 = smov %s646_s14 }
  0xe6   : > { %s794_s14 = smov %s736_s25  ;;  %s795_s15 = smov %s654_s16 }
  0xe7   : > { %s796_s16 = smov %s798_s20  ;;  %16 = sbr.rel (!%p14_p13) target bundleno = 5 (0x5), region = 80 }
  0xec   :  { %373 = vsyncpa [#allocation3], 1 }
  0xed   :  { %375 = vsyncpa [#allocation3 + $0x1], 1 }
  0xee   :  { %376 = vsyncpa [#allocation4], 1 }
  0xef   :  { %378 = vsyncpa [#allocation4 + $0x1], 1 }

</bundles_post_ra>
